<compile_context>
chip_gen: v5e
topology: v5e:2x2
jax: 0.10.0
libtpu: 0.0.40
codegen_flags: <defaults>
</compile_context>

<pallas_src>
import jax
import jax.numpy as jnp
from jax.experimental import pallas as pl
from jax.experimental.pallas import tpu as pltpu


def _wam_kernel(x1_ref, x2_ref, w1a_ref, w1b_ref, b1_ref, w2_ref, b2_ref, o_ref):
    # x1_ref, x2_ref: (Cf, tn)    pixel tiles, pixels on lane axis
    # w1a_ref/w1b_ref: (Mid, Cf)  head conv weight, split over the concat
    # b1_ref: (Mid, 1)
    # w2_ref: (Cout, Mid)         tail conv weight
    # b2_ref: (Cout, 1)
    # o_ref:  (Cout, tn)
    x1 = x1_ref[...]
    x2 = x2_ref[...]
    # Head 1x1 conv with the concat folded into two MXU dots + one VPU add.
    h = (
        jnp.dot(w1a_ref[...], x1, preferred_element_type=jnp.float32)
        + jnp.dot(w1b_ref[...], x2, preferred_element_type=jnp.float32)
        + b1_ref[...]
    )
    h = jnp.maximum(h, 0.0)  # ReLU
    # Tail 1x1 conv.
    y = jnp.dot(w2_ref[...], h, preferred_element_type=jnp.float32) + b2_ref[...]
    o_ref[...] = y.astype(o_ref.dtype)


def wam_pallas(x1, x2, w1, b1, w2, b2, *, tn=8192):
    """x1, x2: (B, inFeat, H, W), NCHW (PyTorch convention).

    w1: (2*inFeat, Mid), b1: (Mid,), w2: (Mid, inFeat), b2: (inFeat,)
    (weights stored as (in, out) matmul matrices, i.e. PyTorch conv weight
    (out, in, 1, 1) transposed and squeezed).
    """
    B, Cf, H, W = x1.shape
    Cin = 2 * Cf
    Mid = w1.shape[1]
    Cout = w2.shape[1]
    assert w1.shape == (Cin, Mid) and w2.shape == (Mid, Cout)
    HW = H * W

    # channels-first pixel matrices -- pure reshapes, no transpose / concat
    x1f = x1.reshape(B, Cf, HW)
    x2f = x2.reshape(B, Cf, HW)

    # pixel tile on the lane axis: multiple of 128, clamped so tiny inputs
    # aren't over-padded
    tn_eff = min(tn, pl.cdiv(HW, 128) * 128)
    HWp = pl.cdiv(HW, tn_eff) * tn_eff
    if HWp != HW:
        pad = ((0, 0), (0, 0), (0, HWp - HW))
        x1f = jnp.pad(x1f, pad)
        x2f = jnp.pad(x2f, pad)

    # weights in (out, in) conv layout; head weight split over the concat
    w1a_t = w1[:Cf, :].T          # (Mid, Cf)  -> acts on x1
    w1b_t = w1[Cf:, :].T          # (Mid, Cf)  -> acts on x2
    w2_t = w2.T                   # (Cout, Mid)
    b1_c = b1.reshape(Mid, 1)
    b2_c = b2.reshape(Cout, 1)

    grid = (B, HWp // tn_eff)
    out = pl.pallas_call(
        _wam_kernel,
        out_shape=jax.ShapeDtypeStruct((B, Cout, HWp), x1.dtype),
        grid_spec=pltpu.PrefetchScalarGridSpec(
            num_scalar_prefetch=0,
            grid=grid,
            in_specs=[
                pl.BlockSpec((None, Cf, tn_eff), lambda b, i: (b, 0, i)),
                pl.BlockSpec((None, Cf, tn_eff), lambda b, i: (b, 0, i)),
                # constant index maps -> weights stay resident in VMEM
                pl.BlockSpec((Mid, Cf), lambda b, i: (0, 0)),
                pl.BlockSpec((Mid, Cf), lambda b, i: (0, 0)),
                pl.BlockSpec((Mid, 1), lambda b, i: (0, 0)),
                pl.BlockSpec((Cout, Mid), lambda b, i: (0, 0)),
                pl.BlockSpec((Cout, 1), lambda b, i: (0, 0)),
            ],
            out_specs=pl.BlockSpec((None, Cout, tn_eff), lambda b, i: (b, 0, i)),
        ),
        compiler_params=pltpu.CompilerParams(
            dimension_semantics=("parallel", "parallel")),
    )(x1f, x2f, w1a_t, w1b_t, b1_c, w2_t, b2_c)

    if HWp != HW:
        out = out[:, :, :HW]
    return out.reshape(B, Cout, H, W)   # already NCHW -- no transpose needed


def wam_reference(x1, x2, w1, b1, w2, b2):
    """Pure-JAX reference matching the PyTorch forward."""
    x = jnp.concatenate([x1, x2], axis=1)                # (B, Cin, H, W)
    x = jnp.transpose(x, (0, 2, 3, 1))                   # NHWC
    h = jnp.maximum(jnp.einsum("bhwc,cm->bhwm", x, w1) + b1, 0.0)
    y = jnp.einsum("bhwm,mo->bhwo", h, w2) + b2
    return jnp.transpose(y, (0, 3, 1, 2))                # NCHW


if __name__ == "__main__":
    # Small shapes consistent with the module: inFeat=2, midFeat=64
    B, inFeat, midFeat, H, W = 2, 2, 64, 16, 16
    Cin = 2 * inFeat

    key = jax.random.PRNGKey(0)
    k1, k2, k3, k4, k5, k6 = jax.random.split(key, 6)

    x1 = jax.random.normal(k1, (B, inFeat, H, W), dtype=jnp.float32)
    x2 = jax.random.normal(k2, (B, inFeat, H, W), dtype=jnp.float32)

    # Deterministic parameter init, stored as (in, out) matmul matrices.
    w1 = jax.random.normal(k3, (Cin, midFeat), dtype=jnp.float32) * 0.1
    b1 = jax.random.normal(k4, (midFeat,), dtype=jnp.float32) * 0.1
    w2 = jax.random.normal(k5, (midFeat, inFeat), dtype=jnp.float32) * 0.1
    b2 = jax.random.normal(k6, (inFeat,), dtype=jnp.float32) * 0.1

    y = wam_pallas(x1, x2, w1, b1, w2, b2)
    y = jax.block_until_ready(y)

    y_ref = wam_reference(x1, x2, w1, b1, w2, b2)
    assert y.shape == (B, inFeat, H, W), y.shape
    assert jnp.allclose(y, y_ref, atol=1e-4, rtol=1e-4), "mismatch vs reference"

    print("KERNEL_OK")
</pallas_src>

<mosaic_0001>
module attributes {stable_mosaic.version = 11 : i64} {
  func.func @_wam_kernel(%arg0: i32, %arg1: i32, %arg2: memref<1x2x256xf32, #tpu.memory_space<vmem>>, %arg3: memref<1x2x256xf32, #tpu.memory_space<vmem>>, %arg4: memref<64x2xf32, #tpu.memory_space<vmem>>, %arg5: memref<64x2xf32, #tpu.memory_space<vmem>>, %arg6: memref<64x1xf32, #tpu.memory_space<vmem>>, %arg7: memref<2x64xf32, #tpu.memory_space<vmem>>, %arg8: memref<2x1xf32, #tpu.memory_space<vmem>>, %arg9: memref<1x2x256xf32, #tpu.memory_space<vmem>>) attributes {dimension_semantics = [#tpu.dimension_semantics<parallel>, #tpu.dimension_semantics<parallel>], iteration_bounds = array<i64: 2, 1>, scalar_prefetch = 0 : i64, scratch_operands = 0 : i64, tpu.core_type = #tpu.core_type<tc>, window_params = [{transform_indices = @transform_0, window_bounds = array<i64: 1, 2, 256>}, {transform_indices = @transform_1, window_bounds = array<i64: 1, 2, 256>}, {pipeline_mode = #tpu.pipeline_mode<synchronous>, transform_indices = @transform_2, window_bounds = array<i64: 64, 2>}, {pipeline_mode = #tpu.pipeline_mode<synchronous>, transform_indices = @transform_3, window_bounds = array<i64: 64, 2>}, {pipeline_mode = #tpu.pipeline_mode<synchronous>, transform_indices = @transform_4, window_bounds = array<i64: 64, 1>}, {pipeline_mode = #tpu.pipeline_mode<synchronous>, transform_indices = @transform_5, window_bounds = array<i64: 2, 64>}, {pipeline_mode = #tpu.pipeline_mode<synchronous>, transform_indices = @transform_6, window_bounds = array<i64: 2, 1>}, {transform_indices = @transform_7, window_bounds = array<i64: 1, 2, 256>}]} {
    %c0 = arith.constant 0 : index
    %c0_0 = arith.constant 0 : index
    %c0_1 = arith.constant 0 : index
    %0 = vector.load %arg2[%c0, %c0_0, %c0_1] : memref<1x2x256xf32, #tpu.memory_space<vmem>>, vector<1x2x256xf32>
    %1 = vector.shape_cast %0 : vector<1x2x256xf32> to vector<2x256xf32>
    %c0_2 = arith.constant 0 : index
    %c0_3 = arith.constant 0 : index
    %c0_4 = arith.constant 0 : index
    %2 = vector.load %arg3[%c0_2, %c0_3, %c0_4] : memref<1x2x256xf32, #tpu.memory_space<vmem>>, vector<1x2x256xf32>
    %3 = vector.shape_cast %2 : vector<1x2x256xf32> to vector<2x256xf32>
    %c0_5 = arith.constant 0 : index
    %c0_6 = arith.constant 0 : index
    %4 = vector.load %arg4[%c0_5, %c0_6] : memref<64x2xf32, #tpu.memory_space<vmem>>, vector<64x2xf32>
    %cst = arith.constant dense<0.000000e+00> : vector<64x256xf32>
    %5 = tpu.matmul %4, %1, %cst {dimension_numbers = #tpu.dot_dimension_numbers<[1], [0], [0], [1], [0, 0, 1, 1], [], []>} : vector<64x2xf32>, vector<2x256xf32>, vector<64x256xf32> -> vector<64x256xf32>
    %c0_7 = arith.constant 0 : index
    %c0_8 = arith.constant 0 : index
    %6 = vector.load %arg5[%c0_7, %c0_8] : memref<64x2xf32, #tpu.memory_space<vmem>>, vector<64x2xf32>
    %cst_9 = arith.constant dense<0.000000e+00> : vector<64x256xf32>
    %7 = tpu.matmul %6, %3, %cst_9 {dimension_numbers = #tpu.dot_dimension_numbers<[1], [0], [0], [1], [0, 0, 1, 1], [], []>} : vector<64x2xf32>, vector<2x256xf32>, vector<64x256xf32> -> vector<64x256xf32>
    %8 = arith.addf %5, %7 : vector<64x256xf32>
    %c0_10 = arith.constant 0 : index
    %c0_11 = arith.constant 0 : index
    %9 = vector.load %arg6[%c0_10, %c0_11] : memref<64x1xf32, #tpu.memory_space<vmem>>, vector<64x1xf32>
    %10 = vector.broadcast %9 : vector<64x1xf32> to vector<64x256xf32>
    %11 = arith.addf %8, %10 : vector<64x256xf32>
    %cst_12 = arith.constant 0.000000e+00 : f32
    %12 = vector.broadcast %cst_12 : f32 to vector<64x256xf32>
    %13 = arith.maximumf %11, %12 : vector<64x256xf32>
    %c0_13 = arith.constant 0 : index
    %c0_14 = arith.constant 0 : index
    %14 = vector.load %arg7[%c0_13, %c0_14] : memref<2x64xf32, #tpu.memory_space<vmem>>, vector<2x64xf32>
    %cst_15 = arith.constant dense<0.000000e+00> : vector<2x256xf32>
    %15 = tpu.matmul %14, %13, %cst_15 {dimension_numbers = #tpu.dot_dimension_numbers<[1], [0], [0], [1], [0, 0, 1, 1], [], []>} : vector<2x64xf32>, vector<64x256xf32>, vector<2x256xf32> -> vector<2x256xf32>
    %c0_16 = arith.constant 0 : index
    %c0_17 = arith.constant 0 : index
    %16 = vector.load %arg8[%c0_16, %c0_17] : memref<2x1xf32, #tpu.memory_space<vmem>>, vector<2x1xf32>
    %17 = vector.broadcast %16 : vector<2x1xf32> to vector<2x256xf32>
    %18 = arith.addf %15, %17 : vector<2x256xf32>
    %c0_18 = arith.constant 0 : index
    %c0_19 = arith.constant 0 : index
    %c0_20 = arith.constant 0 : index
    %19 = vector.load %arg9[%c0_18, %c0_19, %c0_20] : memref<1x2x256xf32, #tpu.memory_space<vmem>>, vector<1x2x256xf32>
    %20 = vector.shape_cast %19 : vector<1x2x256xf32> to vector<2x256xf32>
    %21 = vector.shape_cast %18 : vector<2x256xf32> to vector<1x2x256xf32>
    tpu.vector_store %arg9[%c0_18, %c0_19, %c0_20], %21 {strides = array<i32>} : memref<1x2x256xf32, #tpu.memory_space<vmem>>, vector<1x2x256xf32>,
    return
  }
  func.func @transform_0(%arg0: i32, %arg1: i32) -> (i32, i32, i32) {
    %c0_i32 = arith.constant 0 : i32
    %c0_i32_0 = arith.constant 0 : i32
    return %arg0, %c0_i32, %arg1 : i32, i32, i32
  }
  func.func @transform_1(%arg0: i32, %arg1: i32) -> (i32, i32, i32) {
    %c0_i32 = arith.constant 0 : i32
    %c0_i32_0 = arith.constant 0 : i32
    return %arg0, %c0_i32, %arg1 : i32, i32, i32
  }
  func.func @transform_2(%arg0: i32, %arg1: i32) -> (i32, i32) {
    %c0_i32 = arith.constant 0 : i32
    %c0_i32_0 = arith.constant 0 : i32
    %c0_i32_1 = arith.constant 0 : i32
    return %c0_i32, %c0_i32_0 : i32, i32
  }
  func.func @transform_3(%arg0: i32, %arg1: i32) -> (i32, i32) {
    %c0_i32 = arith.constant 0 : i32
    %c0_i32_0 = arith.constant 0 : i32
    %c0_i32_1 = arith.constant 0 : i32
    return %c0_i32, %c0_i32_0 : i32, i32
  }
  func.func @transform_4(%arg0: i32, %arg1: i32) -> (i32, i32) {
    %c0_i32 = arith.constant 0 : i32
    %c0_i32_0 = arith.constant 0 : i32
    %c0_i32_1 = arith.constant 0 : i32
    return %c0_i32, %c0_i32_0 : i32, i32
  }
  func.func @transform_5(%arg0: i32, %arg1: i32) -> (i32, i32) {
    %c0_i32 = arith.constant 0 : i32
    %c0_i32_0 = arith.constant 0 : i32
    %c0_i32_1 = arith.constant 0 : i32
    return %c0_i32, %c0_i32_0 : i32, i32
  }
  func.func @transform_6(%arg0: i32, %arg1: i32) -> (i32, i32) {
    %c0_i32 = arith.constant 0 : i32
    %c0_i32_0 = arith.constant 0 : i32
    %c0_i32_1 = arith.constant 0 : i32
    return %c0_i32, %c0_i32_0 : i32, i32
  }
  func.func @transform_7(%arg0: i32, %arg1: i32) -> (i32, i32, i32) {
    %c0_i32 = arith.constant 0 : i32
    %c0_i32_0 = arith.constant 0 : i32
    return %arg0, %c0_i32, %arg1 : i32, i32, i32
  }
}

</mosaic_0001>

<bundles_post_ra>
// kernel: tpu_custom_call.1
= control target key start
LH: loop header
LB: loop body
LE: loop exit
PB: predicated region body
PF: predicated region fallthrough
CT: control target
= control target key end

     0   :  { %12 = vsyncpa [#allocation3], 0  ;;  %s1305_s0 = inlined_call_operand.vmem [shape: f32[2,2,256], index: 0, kind: input, shape index: {}]   ;;  %s1306_s1 = inlined_call_operand.vmem [shape: f32[2,2,256], index: 1, kind: input, shape index: {}]   ;;  %s1307_s2 = inlined_call_operand.vmem [shape: f32[64,2], index: 2, kind: input, shape index: {}]   ;;  %s1308_s3 = inlined_call_operand.vmem [shape: f32[64,2], index: 3, kind: input, shape index: {}]   ;;  %s1309_s4 = inlined_call_operand.vmem [shape: f32[64,1], index: 4, kind: input, shape index: {}]   ;;  %s1310_s5 = inlined_call_operand.vmem [shape: f32[2,64], index: 5, kind: input, shape index: {}]   ;;  %s1311_s6 = inlined_call_operand.vmem [shape: f32[2,1], index: 6, kind: input, shape index: {}]   ;;  %s1312_s7 = inlined_call_operand.hbm [shape: f32[2,2,256], index: 7, kind: output, shape index: {}]  }
   0x1   :  { %14 = vsyncpa [#allocation3 + $0x1], 0  ;;  %s1078_s24 = smov 0   ;;  %s1080_s25 = smov 0  }
   0x2   :  { %s1082_s26 = smov 0   ;;  %s1084_s27 = smov 0  }
   0x3   :  { %s1086_s28 = smov 0   ;;  %s1088_s29 = smov 0  }
   0x4 LB: > { %s842_s30 = sadd.s32 4294967295, %s1035_s29   ;;  %s843_s8 = sadd.s32 4294967294, %s1035_s29   ;;  %s1035_s29 = sphi %s1088_s29, %s20_s29   ;;  %s1031_s28 = sphi %s1086_s28, %s1319_s28   ;;  %s1027_s27 = sphi %s1084_s27, %s1318_s27   ;;  %s1023_s26 = sphi %s1082_s26, %s1317_s26   ;;  %s1019_s25 = sphi %s1080_s25, %s1316_s25   ;;  %s1015_s24 = sphi %s1078_s24, %s1315_s24  }
   0x5   : > { %s32_s9 = sadd.s32 1, %s1031_s28  ;;  %s202_s10 = sadd.s32 1, %s1023_s26 }
   0x6   : > { %p34_p0 = scmp.ge.s32.totalorder %s32_s9, 2  ;;  %p212_p1 = scmp.ne.s32.totalorder %s1023_s26, %s1019_s25 }
   0x7   : > { %p213_p2 = scmp.eq.s32.totalorder %s842_s30, 1  ;;  %p218_p3 = scmp.ne.s32.totalorder %s1019_s25, %s1015_s24 }
   0x8   : > { %s1321_s9 = smov (%p34_p0, %s32_s9), 0  ;;  %p219_p5 = scmp.eq.s32.totalorder %s843_s8, 1 }
   0x9   : > { %p1118_p4 = por %p213_p2, %p212_p1  ;;  %s197_s12 = ssub.s32 %s1031_s28, %s1321_s9 }
   0xa   : > { %p846_p6 = scmp.ge.s32.totalorder %s1035_s29, 1  ;;  %p200_p7 = scmp.eq.s32.totalorder %s197_s12, 0 }
   0xb   : > { %p1125_p8 = por %p219_p5, %p218_p3  ;;  %p278_p9 = scmp.lt.s32.totalorder %s1035_s29, 3 }
   0xc   : > { %s1131_s14 = scalar_select %p200_p7, %s1023_s26, %s202_s10  }
   0xd   : > { %p279_p10 = pnand %p846_p6, %p278_p9 }
   0xe   : > { %p324_p11 = scmp.lt.s32.totalorder (!%p279_p10), %s1027_s27, 1  ;;  %s897_s8 = sshll.u32 (!%p279_p10), %s1027_s27, 2 }
   0xf   : > { %282 = sbr.rel (%p279_p10) target bundleno = 385 (0x181), region = 48  ;;  %s743_s15 = scalar_lea.hbm (!%p279_p10), %s1312_s7, %s897_s8 }
  0x10   : > { %s747_s18 = sshll.u32 (!%p279_p10), %s743_s15, 4  ;;  %s748_s18 = int_to_ptr.hbm [resolvable:$true] %s747_s18 }
  0x14   : > { %v597_v0 = vld [vmem:[%s1309_s4 + $0x28] sm:$0xff]  ;;  %v1037_v1 = vmov 0   ;;  %v599_v2 = vld [vmem:[%s1309_s4 + $0x38] sm:$0xff]  ;;  %s325_s19 = scalar_select %p324_p11, %s1027_s27, 1  ;;  %v596_v4 = vld [vmem:[%s1309_s4 + $0x20] sm:$0xff]  ;;  %vm391_vm0 = vcmask 1041408  }
  0x15   : > { %955 = vset.pattern.permute.xlu1 %v1037_v1  ;;  %954 = vset.pattern.permute.xlu0 %v1037_v1  ;;  %v598_v5 = vld [vmem:[%s1309_s4 + $0x30] sm:$0xff]  ;;  %v354_v7 = vld [vmem:[%s1308_s3] sm:$0xff]  ;;  %vm366_vm1 = vcmask 15360   ;;  %v593_v11 = vld [vmem:[%s1309_s4 + $0x8] sm:$0xff]  ;;  %vm679_vm2 = vcmask 523264  }
  0x16   : > { %627 = vperm.xlu1 %955, %v597_v0   ;;  %637 = vperm.xlu0 %954, %v599_v2   ;;  %s895_s20 = sshll.u32 %s325_s19, 2  ;;  %v592_v10 = vld [vmem:[%s1309_s4] sm:$0xff]  ;;  %v355_v13 = vld [vmem:[%s1308_s3 + $0x8] sm:$0xff]  ;;  %v356_v17 = vld [vmem:[%s1308_s3 + $0x10] sm:$0xff]  ;;  %s971_s19 = sshra.s32 %s748_s18, 4  ;;  %s972_s19 = int_to_ptr.hbm [resolvable:$true] %s971_s19 }
  0x17   : > { %956 = vset.pattern.permute.xlu2 %v1037_v1  ;;  %s341_s23 = scalar_lea.vmem %s1306_s1, %s895_s20  ;;  %s331_s17 = scalar_lea.vmem %s1305_s0, %s895_s20  ;;  %v346_v12 = vld [vmem:[%s1307_s2] sm:$0xff]  ;;  %v347_v16 = vld [vmem:[%s1307_s2 + $0x8] sm:$0xff]  ;;  %v348_v18 = vld [vmem:[%s1307_s2 + $0x10] sm:$0xff] }
  0x18   : > { %v345_v3 = vld [vmem:[%s341_s23] sm:$0xf]  ;;  %v357_v19 = vld [vmem:[%s1308_s3 + $0x18] sm:$0xff]  ;;  %v594_v23 = vld [vmem:[%s1309_s4 + $0x10] sm:$0xff]  ;;  %s320_s23 = sand.u32 1, %s1019_s25   ;;  %s973_s21 = scalar_lea.hbm %s972_s19, 4 }
  0x19   : > { %363 = vst [vmem:[#allocation1] ss:$4 sm:$0xff] %v345_v3  ;;  %v344_v6 = vld [vmem:[%s331_s17] sm:$0xf]  ;;  %v595_v20 = vld [vmem:[%s1309_s4 + $0x18] sm:$0xff]  ;;  %v359_v25 = vld [vmem:[%s1308_s3 + $0x28] sm:$0xff]  ;;  %p974_p12 = scmp.ne.s32.totalorder %s972_s19, %s973_s21  ;;  %p978_p1 = scmp.lt.s32.totalorder %s972_s19, %s1312_s7 }
  0x1a   : > { %617 = vperm.xlu2 %956, %v595_v20   ;;  %v349_v21 = vld [vmem:[%s1307_s2 + $0x18] sm:$0xff]  ;;  %v358_v22 = vld [vmem:[%s1308_s3 + $0x20] sm:$0xff]  ;;  %v351_v26 = vld [vmem:[%s1307_s2 + $0x28] sm:$0xff]  ;;  %s847_s30 = sshll.u32 %s320_s23, 2  ;;  %s730_s27 = scalar_lea.sflag [#allocation3], %s320_s23 }
  0x1b   : > { %v350_v24 = vld [vmem:[%s1307_s2 + $0x20] sm:$0xff]  ;;  %v360_v27 = vld [vmem:[%s1308_s3 + $0x30] sm:$0xff]  ;;  %v361_v29 = vld [vmem:[%s1308_s3 + $0x38] sm:$0xff]  ;;  %s322_s16 = scalar_lea.vmem [#allocation2], %s847_s30  ;;  %p975_p13 = pnand %p974_p12, %p1118_p4 }
  0x1c   : > { %v352_v28 = vld [vmem:[%s1307_s2 + $0x30] sm:$0xff]  ;;  %v353_v30 = vld [vmem:[%s1307_s2 + $0x38] sm:$0xff]  ;;  %v673_v31 = vld [vmem:[%s1311_s6] sm:$0x3]  ;;  %s745_s17 = sshll.u32 %s322_s16, 4  ;;  %s977_s30 = scalar_lea.hbm %s1312_s7, 8  ;;  %s746_s17 = int_to_ptr.vmem [resolvable:$true] %s745_s17 }
  0x1d   : > { %p976_p0 = pneg %p975_p13  ;;  %p979_p2 = scmp.lt.s32.totalorder %s977_s30, %s973_s21 }
  0x1e   : > { %622 = vperm.xlu1 %955, %v596_v4   ;;  %632 = vperm.xlu0 %954, %v598_v5  }
  0x1f   : > { %p980_p3 = por %p979_p2, %p978_p1 }
  0x20   : > { %v364_v8 = vld.sshfl [vmem:[#allocation1] sm:$0xff pattern:$0x73625140]  ;;  %v365_v9 = vld.sshfl [vmem:[#allocation1 + $0x8] sm:$0xff pattern:$0x73625140] }
  0x21   : > { %479 = vst [vmem:[#allocation1] ss:$4 sm:$0xff] %v344_v6  ;;  %852 = vmatpush.msk.msra.mxu0 %vm391_vm0, %v364_v8  ;;  %861 = vmatpush.msk.msra.mxu1 %vm391_vm0, %v365_v9  ;;  %p981_p5 = pnand %p980_p3, %p976_p0 }
  0x22   : > { %853 = vmatmul.msk.f32.vlgmr.msra.gmra.mxu0 %vm366_vm1, %v354_v7  ;;  %862 = vmatmul.msk.f32.vlgmr.msra.gmra.mxu1 %vm366_vm1, %v354_v7 }
  0x23   : > { %612 = vperm.xlu2 %956, %v594_v23  }
  0x26   : > { %602 = vperm.xlu1 %955, %v592_v10   ;;  %607 = vperm.xlu0 %954, %v593_v11  }
  0x28   : > { %v480_v14 = vld.sshfl [vmem:[#allocation1] sm:$0xff pattern:$0x73625140]  ;;  %v481_v15 = vld.sshfl [vmem:[#allocation1 + $0x8] sm:$0xff pattern:$0x73625140] }
  0x29   : > { %870 = vmatpush.msk.msra.mxu2 %vm391_vm0, %v480_v14  ;;  %879 = vmatpush.msk.msra.mxu3 %vm391_vm0, %v481_v15 }
  0x2a   : > { %871 = vmatmul.msk.f32.vlgmr.msra.gmra.mxu2 %vm366_vm1, %v346_v12  ;;  %880 = vmatmul.msk.f32.vlgmr.msra.gmra.mxu3 %vm366_vm1, %v346_v12 }
  0x2b   : > { %854 = vmatmul.msk.f32.gmra.mxu0 %vm366_vm1, %v355_v13  ;;  %863 = vmatmul.msk.f32.gmra.mxu1 %vm366_vm1, %v355_v13 }
  0x2c   : > { %676 = vperm.xlu2 %956, %v673_v31  }
  0x32   : > { %872 = vmatmul.msk.f32.gmra.mxu2 %vm366_vm1, %v347_v16  ;;  %881 = vmatmul.msk.f32.gmra.mxu3 %vm366_vm1, %v347_v16 }
  0x33   : > { %855 = vmatmul.msk.f32.gmra.mxu0 %vm366_vm1, %v356_v17  ;;  %864 = vmatmul.msk.f32.gmra.mxu1 %vm366_vm1, %v356_v17 }
  0x3a   : > { %873 = vmatmul.msk.f32.gmra.mxu2 %vm366_vm1, %v348_v18  ;;  %882 = vmatmul.msk.f32.gmra.mxu3 %vm366_vm1, %v348_v18 }
  0x3b   : > { %856 = vmatmul.msk.f32.gmra.mxu0 %vm366_vm1, %v357_v19  ;;  %865 = vmatmul.msk.f32.gmra.mxu1 %vm366_vm1, %v357_v19 }
  0x42   : > { %874 = vmatmul.msk.f32.gmra.mxu2 %vm366_vm1, %v349_v21  ;;  %883 = vmatmul.msk.f32.gmra.mxu3 %vm366_vm1, %v349_v21 }
  0x43   : > { %857 = vmatmul.msk.f32.gmra.mxu0 %vm366_vm1, %v358_v22  ;;  %866 = vmatmul.msk.f32.gmra.mxu1 %vm366_vm1, %v358_v22 }
  0x4a   : > { %875 = vmatmul.msk.f32.gmra.mxu2 %vm366_vm1, %v350_v24  ;;  %884 = vmatmul.msk.f32.gmra.mxu3 %vm366_vm1, %v350_v24 }
  0x4b   : > { %858 = vmatmul.msk.f32.gmra.mxu0 %vm366_vm1, %v359_v25  ;;  %867 = vmatmul.msk.f32.gmra.mxu1 %vm366_vm1, %v359_v25 }
  0x52   : > { %876 = vmatmul.msk.f32.gmra.mxu2 %vm366_vm1, %v351_v26  ;;  %885 = vmatmul.msk.f32.gmra.mxu3 %vm366_vm1, %v351_v26 }
  0x53   : > { %859 = vmatmul.msk.f32.gmra.mxu0 %vm366_vm1, %v360_v27  ;;  %868 = vmatmul.msk.f32.gmra.mxu1 %vm366_vm1, %v360_v27 }
  0x5a   : > { %877 = vmatmul.msk.f32.gmra.mxu2 %vm366_vm1, %v352_v28  ;;  %886 = vmatmul.msk.f32.gmra.mxu3 %vm366_vm1, %v352_v28 }
  0x5b   : > { %860 = vmatmul.msk.f32.gmra.mxu0 %vm366_vm1, %v361_v29  ;;  %869 = vmatmul.msk.f32.gmra.mxu1 %vm366_vm1, %v361_v29 }
  0x62   : > { %878 = vmatmul.msk.f32.gmra.mxu2 %vm366_vm1, %v353_v30  ;;  %887 = vmatmul.msk.f32.gmra.mxu3 %vm366_vm1, %v353_v30 }
  0x74   : > { %v618_v0 = vpop.permute.xlu2 %617 }
  0x88   : > { %v638_v60 = vpop.permute.xlu0 %637  ;;  %v628_v61 = vpop.permute.xlu1 %627 }
  0x90   : > { %v633_v3 = vpop.permute.xlu0 %632  ;;  %v623_v12 = vpop.permute.xlu1 %622 }
  0x9f   : > { %v413_v32 = vpop.f32.mrf.mxu0  ;;  %v454_v33 = vpop.f32.mrf.mxu1 }
  0xa8   : > { %v1252_v34 = vpop.f32.mrf.mxu0  ;;  %v1254_v35 = vpop.f32.mrf.mxu1 }
  0xad   : > { %v527_v36 = vpop.f32.mrf.mxu2  ;;  %v568_v37 = vpop.f32.mrf.mxu3 }
  0xae   : > { %v1256_v38 = vadd.f32 %v527_v36, %v413_v32  ;;  %v1258_v39 = vadd.f32 %v568_v37, %v454_v33  ;;  %v613_v33 = vpop.permute.xlu2 %612 }
  0xb0   : > { %v419_v40 = vpop.f32.mrf.mxu0  ;;  %v460_v41 = vpop.f32.mrf.mxu1 }
  0xb5   : > { %v530_v42 = vpop.f32.mrf.mxu2  ;;  %v571_v43 = vpop.f32.mrf.mxu3 }
  0xb6   : > { %v531_v31 = vadd.f32 %v530_v42, %v1252_v34  ;;  %v572_v32 = vadd.f32 %v571_v43, %v1254_v35 }
  0xb8   : > { %v422_v44 = vpop.f32.mrf.mxu0  ;;  %v463_v45 = vpop.f32.mrf.mxu1 }
  0xbd   : > { %v533_v46 = vpop.f32.mrf.mxu2  ;;  %v574_v47 = vpop.f32.mrf.mxu3 }
  0xbe   : > { %v534_v25 = vadd.f32 %v533_v46, %v419_v40  ;;  %v575_v26 = vadd.f32 %v574_v47, %v460_v41 }
  0xc0   : > { %v425_v48 = vpop.f32.mrf.mxu0  ;;  %v466_v49 = vpop.f32.mrf.mxu1  ;;  %v644_v40 = vadd.f32 %v613_v33, %v534_v25  ;;  %v645_v41 = vadd.f32 %v613_v33, %v575_v26 }
  0xc5   : > { %v536_v50 = vpop.f32.mrf.mxu2  ;;  %v577_v51 = vpop.f32.mrf.mxu3 }
  0xc6   : > { %v537_v19 = vadd.f32 %v536_v50, %v422_v44  ;;  %v578_v20 = vadd.f32 %v577_v51, %v463_v45 }
  0xc8   : > { %v428_v54 = vpop.f32.mrf.mxu0  ;;  %v469_v55 = vpop.f32.mrf.mxu1  ;;  %v646_v44 = vadd.f32 %v618_v0, %v537_v19  ;;  %v647_v45 = vadd.f32 %v618_v0, %v578_v20 }
  0xca   : > { %v662_v34 = vmax.f32 %v646_v44, 0.0  ;;  %v663_v35 = vmax.f32 %v647_v45, 0.0 }
  0xcd   : > { %v539_v52 = vpop.f32.mrf.mxu2  ;;  %v580_v53 = vpop.f32.mrf.mxu3 }
  0xce   : > { %v540_v13 = vadd.f32 %v539_v52, %v425_v48  ;;  %v581_v14 = vadd.f32 %v580_v53, %v466_v49  ;;  %v608_v48 = vpop.permute.xlu0 %607  ;;  %v603_v49 = vpop.permute.xlu1 %602  ;;  %v660_v52 = vmax.f32 %v644_v40, 0.0  ;;  %v661_v53 = vmax.f32 %v645_v41, 0.0 }
  0xcf   : > { %v642_v50 = vadd.f32 %v608_v48, %v531_v31  ;;  %v643_v51 = vadd.f32 %v608_v48, %v572_v32  ;;  %v640_v42 = vadd.f32 %v603_v49, %v1256_v38  ;;  %v641_v43 = vadd.f32 %v603_v49, %v1258_v39  ;;  %v672_v38 = vld [vmem:[%s1310_s5] sm:$0x3]  ;;  %v677_v39 = vpop.permute.xlu2 %676 }
  0xd0   : > { %v431_v58 = vpop.f32.mrf.mxu0  ;;  %v472_v59 = vpop.f32.mrf.mxu1  ;;  %v648_v29 = vadd.f32 %v623_v12, %v540_v13  ;;  %v649_v30 = vadd.f32 %v623_v12, %v581_v14 }
  0xd2   : > { %v664_v46 = vmax.f32 %v648_v29, 0.0  ;;  %v665_v47 = vmax.f32 %v649_v30, 0.0 }
  0xd5   : > { %v542_v56 = vpop.f32.mrf.mxu2  ;;  %v583_v57 = vpop.f32.mrf.mxu3 }
  0xd6   : > { %v543_v8 = vadd.f32 %v542_v56, %v428_v54  ;;  %v584_v9 = vadd.f32 %v583_v57, %v469_v55  ;;  %v658_v54 = vmax.f32 %v642_v50, 0.0  ;;  %v659_v55 = vmax.f32 %v643_v51, 0.0 }
  0xd7   : > { %v656_v56 = vmax.f32 %v640_v42, 0.0  ;;  %v657_v57 = vmax.f32 %v641_v43, 0.0 }
  0xd8   : > { %v434_v1 = vpop.f32.mrf.mxu0  ;;  %v475_v2 = vpop.f32.mrf.mxu1  ;;  %v650_v23 = vadd.f32 %v628_v61, %v543_v8  ;;  %v651_v24 = vadd.f32 %v628_v61, %v584_v9 }
  0xda   : > { %v666_v36 = vmax.f32 %v650_v23, 0.0  ;;  %v667_v37 = vmax.f32 %v651_v24, 0.0 }
  0xdd   : > { %v545_v62 = vpop.f32.mrf.mxu2  ;;  %v586_v63 = vpop.f32.mrf.mxu3 }
  0xde   : > { %v546_v4 = vadd.f32 %v545_v62, %v431_v58  ;;  %v587_v5 = vadd.f32 %v586_v63, %v472_v59 }
  0xe0   : > { %v652_v17 = vadd.f32 %v633_v3, %v546_v4  ;;  %v653_v18 = vadd.f32 %v633_v3, %v587_v5 }
  0xe2   : > { %v668_v27 = vmax.f32 %v652_v17, 0.0  ;;  %v669_v28 = vmax.f32 %v653_v18, 0.0 }
  0xe5   : > { %v548_v6 = vpop.f32.mrf.mxu2  ;;  %v589_v7 = vpop.f32.mrf.mxu3 }
  0xe6   : > { %v549_v10 = vadd.f32 %v548_v6, %v434_v1  ;;  %v590_v11 = vadd.f32 %v589_v7, %v475_v2 }
  0xe8   : > { %v654_v15 = vadd.f32 %v638_v60, %v549_v10  ;;  %v655_v16 = vadd.f32 %v638_v60, %v590_v11 }
  0xea   : > { %v670_v21 = vmax.f32 %v654_v15, 0.0  ;;  %v671_v22 = vmax.f32 %v655_v16, 0.0 }
  0xec   : > { %691 = vmatpush.msrb.mxu0 %v670_v21  ;;  %711 = vmatpush.msrb.mxu1 %v671_v22 }
  0xee   : > { %692 = vmatpush.msrb.mxu0 %v668_v27  ;;  %712 = vmatpush.msrb.mxu1 %v669_v28 }
  0xf0   : > { %693 = vmatpush.msrb.mxu0 %v666_v36  ;;  %713 = vmatpush.msrb.mxu1 %v667_v37 }
  0xf2   : > { %694 = vmatpush.msrb.mxu0 %v664_v46  ;;  %714 = vmatpush.msrb.mxu1 %v665_v47 }
  0xf4   : > { %695 = vmatpush.msrb.mxu0 %v662_v34  ;;  %715 = vmatpush.msrb.mxu1 %v663_v35 }
  0xf6   : > { %696 = vmatpush.msrb.mxu0 %v660_v52  ;;  %716 = vmatpush.msrb.mxu1 %v661_v53 }
  0xf8   : > { %697 = vmatpush.msrb.mxu0 %v658_v54  ;;  %717 = vmatpush.msrb.mxu1 %v659_v55 }
  0xfa   : > { %698 = vmatpush.msrb.mxu0 %v656_v56  ;;  %718 = vmatpush.msrb.mxu1 %v657_v57 }
  0xfb   : > { %888 = vmatmul.msk.f32.vlgmr.msrb.gmra.mxu0 %vm679_vm2, %v672_v38  ;;  %889 = vmatmul.msk.f32.vlgmr.msrb.gmra.mxu1 %vm679_vm2, %v672_v38 }
 0x178   : > { %v700_v58 = vpop.f32.mrf.mxu0  ;;  %v720_v59 = vpop.f32.mrf.mxu1 }
 0x179   : > { %v721_v60 = vadd.f32 %v720_v59, %v677_v39  ;;  %v701_v61 = vadd.f32 %v700_v58, %v677_v39 }
 0x17b   : > { %v725_v62 = vrot.slane %v721_v60, 6 }
 0x17d   : > { %v726_v63 = vsel %vm391_vm0, %v701_v61, %v725_v62 }
 0x17e   : > { %728 = vst [vmem:[%s322_s16] sm:$0xf] %v726_v63 }
 0x17f   : > { %984 = shalt.err (!%p981_p5)
}
 0x180   : > { %898 = dma.vmem_to_hbm [thread:$0]  (%p1118_p4), %s746_s17, 64, %s748_s18, %s730_s27  }
 0x181 PF: > { %p904_p6 = scmp.ge.s32.totalorder %s1035_s29, 2  ;;  %s759_s23 = sand.u32 1, %s1015_s24  }
 0x182   : > { %s760_s12 = scalar_lea.sflag [#allocation3], %s759_s23 }
 0x183   : > { %p901_p7 = pnand %p904_p6, %p1125_p8 }
 0x185   : > { %p902_p9 = pneg %p901_p7 }
 0x187   : > { %1010 = dma.done.wait (%p902_p9), %s760_s12, 64  }
 0x188   : > { %1012 = vsyncadd (%p902_p9), %s760_s12, 4294967232  ;;  %s20_s29 = sadd.s32 1, %s1035_s29   ;;  %s1315_s24 = smov %s1019_s25 }
 0x189   : > { %p17_p10 = scmp.ge.s32.totalorder %s20_s29, 4   ;;  %s1316_s25 = smov %s1023_s26 }
 0x18a   : > { %s1317_s26 = smov %s1131_s14  ;;  %s1318_s27 = smov %s1031_s28 }
 0x18b   : > { %s1319_s28 = smov %s1321_s9  ;;  %19 = sbr.rel (!%p17_p10) target bundleno = 4 (0x4), region = 86 }
 0x190   :  { %766 = vsyncpa [#allocation3], 1 }
 0x191   :  { %768 = vsyncpa [#allocation3 + $0x1], 1 }

</bundles_post_ra>
